<compile_context>
chip_gen: v7x
topology: tpu7x:2x2x1
jax: 0.10.0
libtpu: 0.0.40
codegen_flags: <defaults>
</compile_context>

<pallas_src>
import functools

import jax
import jax.numpy as jnp
import numpy as np
from jax import lax
from jax.experimental import pallas as pl
from jax.experimental.pallas import tpu as pltpu


def _atrous_module_kernel(x_ref, w_ref, b_ref, m_ref, o_ref, *, H, W, C, rate):
    """Fully fused Atrous_module forward for one batch element.

    x_ref : (1, C, H*W)    input, spatial flattened onto the lane axis
    w_ref : (NC, 9*C)      composed conv+fc1+fc2 weights, tap-major (ky, kx, cin)
    b_ref : (NC, 1)        composed bias
    m_ref : (9, 1, H*W)    per-tap edge-validity masks (0/1, static)
    o_ref : (1, NC, H*W)   lane-dense output (reshaped to NCHW for free outside)
    """
    HW = H * W
    x = x_ref[0].astype(jnp.float32)                      # (C, HW)

    # Build the im2col block: 9 dilated-conv taps = static lane shifts of the
    # flattened image; the mask zeroes positions whose tap falls off the image
    # (this reproduces the implicit zero padding of padding=rate).
    taps = []
    t = 0
    for ky in range(3):
        for kx in range(3):
            dy, dx = (ky - 1) * rate, (kx - 1) * rate
            s = dy * W + dx                               # static flattened shift
            if s > 0:
                shifted = jnp.concatenate(
                    [x[:, s:], jnp.zeros((C, s), jnp.float32)], axis=1)
            elif s < 0:
                shifted = jnp.concatenate(
                    [jnp.zeros((C, -s), jnp.float32), x[:, :HW + s]], axis=1)
            else:
                shifted = x
            taps.append(shifted * m_ref[t])               # (C, HW)
            t += 1
    patches = jnp.concatenate(taps, axis=0)               # (9*C, HW)

    # Single MXU push: (NC, 9*C) x (9*C, HW) -> (NC, HW); HW on lanes.
    out = jnp.dot(w_ref[...], patches, preferred_element_type=jnp.float32)
    out = out + b_ref[...]                                # (NC, 1) broadcast
    o_ref[0] = out.astype(o_ref.dtype)


@functools.partial(jax.jit, static_argnames=("rate",))
def atrous_module_forward(x, wa, ba, w1, b1, w2, b2, rate):
    """x: (N, C, H, W); weights in PyTorch OIHW layout. Returns (N, NC, H, W)."""
    N, C, H, W = x.shape
    NC = w2.shape[0]
    HW = H * W

    # --- Pre-compose the three linear stages (no activation between them) ----
    # y = w2 @ (w1 @ (conv(x; wa) + ba) + b1) + b2
    #   = conv(x; Wc) + bc,  Wc = (w2 w1) * wa folded over channels.
    w1m = w1[:, :, 0, 0]                                   # (C, C)
    w2m = w2[:, :, 0, 0]                                   # (NC, C)
    M = w2m @ w1m                                          # (NC, C)
    wc = jnp.einsum('oc,cihw->oihw', M, wa)                # (NC, C, 3, 3)
    # tap-major flattening: column index = (ky*3 + kx)*C + cin
    w_flat = jnp.transpose(wc, (0, 2, 3, 1)).reshape(NC, 9 * C).astype(jnp.float32)
    b_comp = (M @ ba + w2m @ b1 + b2).reshape(NC, 1).astype(jnp.float32)

    # --- Static edge-validity masks (computed at trace time, tiny constant) ---
    hh, ww = np.meshgrid(np.arange(H), np.arange(W), indexing='ij')
    masks = np.empty((9, 1, HW), np.float32)
    t = 0
    for ky in range(3):
        for kx in range(3):
            dy, dx = (ky - 1) * rate, (kx - 1) * rate
            valid = ((hh + dy >= 0) & (hh + dy < H) &
                     (ww + dx >= 0) & (ww + dx < W))
            masks[t, 0] = valid.reshape(-1).astype(np.float32)
            t += 1
    masks = jnp.asarray(masks)

    # Free, contiguous reshape (no HBM pass): spatial onto the lane axis.
    x_flat = x.reshape(N, C, HW)

    kernel = functools.partial(_atrous_module_kernel, H=H, W=W, C=C, rate=rate)

    # Grid over batch only; one block holds the whole (tiny) image.
    # TODO(synk): at production DeepLab sizes (C~256, H,W~65+), add a row-tile
    # grid axis (marked "parallel" for v7x's 2 TCs) and set vmem_limit_bytes.
    out_flat = pl.pallas_call(
        kernel,
        out_shape=jax.ShapeDtypeStruct((N, NC, HW), x.dtype),
        grid_spec=pltpu.PrefetchScalarGridSpec(
            num_scalar_prefetch=0,
            grid=(N,),
            in_specs=[
                pl.BlockSpec((1, C, HW), lambda n: (n, 0, 0)),
                pl.BlockSpec((NC, 9 * C), lambda n: (0, 0)),
                pl.BlockSpec((NC, 1), lambda n: (0, 0)),
                pl.BlockSpec((9, 1, HW), lambda n: (0, 0, 0)),
            ],
            out_specs=pl.BlockSpec((1, NC, HW), lambda n: (n, 0, 0)),
        ),
        compiler_params=pltpu.CompilerParams(dimension_semantics=("parallel",)),
    )(x_flat, w_flat, b_comp, masks)

    return out_flat.reshape(N, NC, H, W)                   # free reshape to NCHW


def ref_forward(x, wa, ba, w1, b1, w2, b2, rate):
    """Pure-JAX NCHW reference (mirrors the PyTorch module exactly)."""
    dn = ('NCHW', 'OIHW', 'NCHW')
    y = lax.conv_general_dilated(x, wa, (1, 1), [(rate, rate), (rate, rate)],
                                 rhs_dilation=(rate, rate),
                                 dimension_numbers=dn) + ba[None, :, None, None]
    y = lax.conv_general_dilated(y, w1, (1, 1), 'VALID',
                                 dimension_numbers=dn) + b1[None, :, None, None]
    y = lax.conv_general_dilated(y, w2, (1, 1), 'VALID',
                                 dimension_numbers=dn) + b2[None, :, None, None]
    return y


if __name__ == "__main__":
    # Atrous_module(inplanes=8, num_classes=4, rate=2) at small shapes.
    N, C, H, W = 2, 8, 16, 16
    NC = 4
    rate = 2

    keys = jax.random.split(jax.random.PRNGKey(0), 7)
    x = jax.random.normal(keys[0], (N, C, H, W), jnp.float32)
    # Deterministic synthetic params (PyTorch-ish fan-in scaled uniform init).
    wa = jax.random.uniform(keys[1], (C, C, 3, 3), jnp.float32, -1, 1) / np.sqrt(C * 9)
    ba = jax.random.uniform(keys[2], (C,), jnp.float32, -1, 1) / np.sqrt(C * 9)
    w1 = jax.random.uniform(keys[3], (C, C, 1, 1), jnp.float32, -1, 1) / np.sqrt(C)
    b1 = jax.random.uniform(keys[4], (C,), jnp.float32, -1, 1) / np.sqrt(C)
    w2 = jax.random.uniform(keys[5], (NC, C, 1, 1), jnp.float32, -1, 1) / np.sqrt(C)
    b2 = jax.random.uniform(keys[6], (NC,), jnp.float32, -1, 1) / np.sqrt(C)

    out = atrous_module_forward(x, wa, ba, w1, b1, w2, b2, rate=rate)
    out = jax.block_until_ready(out)
    assert out.shape == (N, NC, H, W), out.shape

    ref = jax.block_until_ready(ref_forward(x, wa, ba, w1, b1, w2, b2, rate))
    if not np.allclose(np.asarray(out), np.asarray(ref), atol=5e-4, rtol=5e-4):
        err = float(np.max(np.abs(np.asarray(out) - np.asarray(ref))))
        raise RuntimeError(f"Pallas output does not match reference (max abs err {err})")

    print("KERNEL_OK")
</pallas_src>

<mosaic_0001>
module attributes {stable_mosaic.version = 11 : i64} {
  func.func @_atrous_module_kernel(%arg0: i32, %arg1: memref<1x8x256xf32, #tpu.memory_space<vmem>>, %arg2: memref<4x72xf32, #tpu.memory_space<vmem>>, %arg3: memref<4x1xf32, #tpu.memory_space<vmem>>, %arg4: memref<9x1x256xf32, #tpu.memory_space<vmem>>, %arg5: memref<1x4x256xf32, #tpu.memory_space<vmem>>) attributes {dimension_semantics = [#tpu.dimension_semantics<parallel>], iteration_bounds = array<i64: 2>, scalar_prefetch = 0 : i64, scratch_operands = 0 : i64, tpu.core_type = #tpu.core_type<tc>, window_params = [{transform_indices = @transform_0, window_bounds = array<i64: 1, 8, 256>}, {pipeline_mode = #tpu.pipeline_mode<synchronous>, transform_indices = @transform_1, window_bounds = array<i64: 4, 72>}, {pipeline_mode = #tpu.pipeline_mode<synchronous>, transform_indices = @transform_2, window_bounds = array<i64: 4, 1>}, {pipeline_mode = #tpu.pipeline_mode<synchronous>, transform_indices = @transform_3, window_bounds = array<i64: 9, 1, 256>}, {transform_indices = @transform_4, window_bounds = array<i64: 1, 4, 256>}]} {
    %c0 = arith.constant 0 : index
    %c0_0 = arith.constant 0 : index
    %c0_1 = arith.constant 0 : index
    %0 = vector.load %arg1[%c0, %c0_0, %c0_1] : memref<1x8x256xf32, #tpu.memory_space<vmem>>, vector<1x8x256xf32>
    %1 = vector.shape_cast %0 : vector<1x8x256xf32> to vector<8x256xf32>
    %cst = arith.constant 0.000000e+00 : f32
    %2 = vector.broadcast %cst : f32 to vector<8x34xf32>
    %3 = vector.extract_strided_slice %1 {offsets = [0, 0], sizes = [8, 222], strides = [1, 1]} : vector<8x256xf32> to vector<8x222xf32>
    %4 = tpu.concatenate %2, %3 in 1 : vector<8x34xf32>, vector<8x222xf32> -> vector<8x256xf32>
    %c0_2 = arith.constant 0 : index
    %c0_3 = arith.constant 0 : index
    %c0_4 = arith.constant 0 : index
    %5 = vector.load %arg4[%c0_2, %c0_3, %c0_4] : memref<9x1x256xf32, #tpu.memory_space<vmem>>, vector<1x1x256xf32>
    %6 = vector.shape_cast %5 : vector<1x1x256xf32> to vector<1x256xf32>
    %7 = vector.broadcast %6 : vector<1x256xf32> to vector<8x256xf32>
    %8 = arith.mulf %4, %7 : vector<8x256xf32>
    %cst_5 = arith.constant 0.000000e+00 : f32
    %9 = vector.broadcast %cst_5 : f32 to vector<8x32xf32>
    %10 = vector.extract_strided_slice %1 {offsets = [0, 0], sizes = [8, 224], strides = [1, 1]} : vector<8x256xf32> to vector<8x224xf32>
    %11 = tpu.concatenate %9, %10 in 1 : vector<8x32xf32>, vector<8x224xf32> -> vector<8x256xf32>
    %c1 = arith.constant 1 : index
    %c0_6 = arith.constant 0 : index
    %c0_7 = arith.constant 0 : index
    %12 = vector.load %arg4[%c1, %c0_6, %c0_7] : memref<9x1x256xf32, #tpu.memory_space<vmem>>, vector<1x1x256xf32>
    %13 = vector.shape_cast %12 : vector<1x1x256xf32> to vector<1x256xf32>
    %14 = vector.broadcast %13 : vector<1x256xf32> to vector<8x256xf32>
    %15 = arith.mulf %11, %14 : vector<8x256xf32>
    %cst_8 = arith.constant 0.000000e+00 : f32
    %16 = vector.broadcast %cst_8 : f32 to vector<8x30xf32>
    %17 = vector.extract_strided_slice %1 {offsets = [0, 0], sizes = [8, 226], strides = [1, 1]} : vector<8x256xf32> to vector<8x226xf32>
    %18 = tpu.concatenate %16, %17 in 1 : vector<8x30xf32>, vector<8x226xf32> -> vector<8x256xf32>
    %c2 = arith.constant 2 : index
    %c0_9 = arith.constant 0 : index
    %c0_10 = arith.constant 0 : index
    %19 = vector.load %arg4[%c2, %c0_9, %c0_10] : memref<9x1x256xf32, #tpu.memory_space<vmem>>, vector<1x1x256xf32>
    %20 = vector.shape_cast %19 : vector<1x1x256xf32> to vector<1x256xf32>
    %21 = vector.broadcast %20 : vector<1x256xf32> to vector<8x256xf32>
    %22 = arith.mulf %18, %21 : vector<8x256xf32>
    %cst_11 = arith.constant 0.000000e+00 : f32
    %23 = vector.broadcast %cst_11 : f32 to vector<8x2xf32>
    %24 = vector.extract_strided_slice %1 {offsets = [0, 0], sizes = [8, 254], strides = [1, 1]} : vector<8x256xf32> to vector<8x254xf32>
    %25 = tpu.concatenate %23, %24 in 1 : vector<8x2xf32>, vector<8x254xf32> -> vector<8x256xf32>
    %c3 = arith.constant 3 : index
    %c0_12 = arith.constant 0 : index
    %c0_13 = arith.constant 0 : index
    %26 = vector.load %arg4[%c3, %c0_12, %c0_13] : memref<9x1x256xf32, #tpu.memory_space<vmem>>, vector<1x1x256xf32>
    %27 = vector.shape_cast %26 : vector<1x1x256xf32> to vector<1x256xf32>
    %28 = vector.broadcast %27 : vector<1x256xf32> to vector<8x256xf32>
    %29 = arith.mulf %25, %28 : vector<8x256xf32>
    %c4 = arith.constant 4 : index
    %c0_14 = arith.constant 0 : index
    %c0_15 = arith.constant 0 : index
    %30 = vector.load %arg4[%c4, %c0_14, %c0_15] : memref<9x1x256xf32, #tpu.memory_space<vmem>>, vector<1x1x256xf32>
    %31 = vector.shape_cast %30 : vector<1x1x256xf32> to vector<1x256xf32>
    %32 = vector.broadcast %31 : vector<1x256xf32> to vector<8x256xf32>
    %33 = arith.mulf %1, %32 : vector<8x256xf32>
    %34 = vector.extract_strided_slice %1 {offsets = [0, 2], sizes = [8, 254], strides = [1, 1]} : vector<8x256xf32> to vector<8x254xf32>
    %cst_16 = arith.constant 0.000000e+00 : f32
    %35 = vector.broadcast %cst_16 : f32 to vector<8x2xf32>
    %36 = tpu.concatenate %34, %35 in 1 : vector<8x254xf32>, vector<8x2xf32> -> vector<8x256xf32>
    %c5 = arith.constant 5 : index
    %c0_17 = arith.constant 0 : index
    %c0_18 = arith.constant 0 : index
    %37 = vector.load %arg4[%c5, %c0_17, %c0_18] : memref<9x1x256xf32, #tpu.memory_space<vmem>>, vector<1x1x256xf32>
    %38 = vector.shape_cast %37 : vector<1x1x256xf32> to vector<1x256xf32>
    %39 = vector.broadcast %38 : vector<1x256xf32> to vector<8x256xf32>
    %40 = arith.mulf %36, %39 : vector<8x256xf32>
    %41 = vector.extract_strided_slice %1 {offsets = [0, 30], sizes = [8, 226], strides = [1, 1]} : vector<8x256xf32> to vector<8x226xf32>
    %cst_19 = arith.constant 0.000000e+00 : f32
    %42 = vector.broadcast %cst_19 : f32 to vector<8x30xf32>
    %43 = tpu.concatenate %41, %42 in 1 : vector<8x226xf32>, vector<8x30xf32> -> vector<8x256xf32>
    %c6 = arith.constant 6 : index
    %c0_20 = arith.constant 0 : index
    %c0_21 = arith.constant 0 : index
    %44 = vector.load %arg4[%c6, %c0_20, %c0_21] : memref<9x1x256xf32, #tpu.memory_space<vmem>>, vector<1x1x256xf32>
    %45 = vector.shape_cast %44 : vector<1x1x256xf32> to vector<1x256xf32>
    %46 = vector.broadcast %45 : vector<1x256xf32> to vector<8x256xf32>
    %47 = arith.mulf %43, %46 : vector<8x256xf32>
    %48 = vector.extract_strided_slice %1 {offsets = [0, 32], sizes = [8, 224], strides = [1, 1]} : vector<8x256xf32> to vector<8x224xf32>
    %cst_22 = arith.constant 0.000000e+00 : f32
    %49 = vector.broadcast %cst_22 : f32 to vector<8x32xf32>
    %50 = tpu.concatenate %48, %49 in 1 : vector<8x224xf32>, vector<8x32xf32> -> vector<8x256xf32>
    %c7 = arith.constant 7 : index
    %c0_23 = arith.constant 0 : index
    %c0_24 = arith.constant 0 : index
    %51 = vector.load %arg4[%c7, %c0_23, %c0_24] : memref<9x1x256xf32, #tpu.memory_space<vmem>>, vector<1x1x256xf32>
    %52 = vector.shape_cast %51 : vector<1x1x256xf32> to vector<1x256xf32>
    %53 = vector.broadcast %52 : vector<1x256xf32> to vector<8x256xf32>
    %54 = arith.mulf %50, %53 : vector<8x256xf32>
    %55 = vector.extract_strided_slice %1 {offsets = [0, 34], sizes = [8, 222], strides = [1, 1]} : vector<8x256xf32> to vector<8x222xf32>
    %cst_25 = arith.constant 0.000000e+00 : f32
    %56 = vector.broadcast %cst_25 : f32 to vector<8x34xf32>
    %57 = tpu.concatenate %55, %56 in 1 : vector<8x222xf32>, vector<8x34xf32> -> vector<8x256xf32>
    %c8 = arith.constant 8 : index
    %c0_26 = arith.constant 0 : index
    %c0_27 = arith.constant 0 : index
    %58 = vector.load %arg4[%c8, %c0_26, %c0_27] : memref<9x1x256xf32, #tpu.memory_space<vmem>>, vector<1x1x256xf32>
    %59 = vector.shape_cast %58 : vector<1x1x256xf32> to vector<1x256xf32>
    %60 = vector.broadcast %59 : vector<1x256xf32> to vector<8x256xf32>
    %61 = arith.mulf %57, %60 : vector<8x256xf32>
    %62 = tpu.concatenate %8, %15, %22, %29, %33, %40, %47, %54, %61 in 0 : vector<8x256xf32>, vector<8x256xf32>, vector<8x256xf32>, vector<8x256xf32>, vector<8x256xf32>, vector<8x256xf32>, vector<8x256xf32>, vector<8x256xf32>, vector<8x256xf32> -> vector<72x256xf32>
    %c0_28 = arith.constant 0 : index
    %c0_29 = arith.constant 0 : index
    %63 = vector.load %arg2[%c0_28, %c0_29] : memref<4x72xf32, #tpu.memory_space<vmem>>, vector<4x72xf32>
    %cst_30 = arith.constant dense<0.000000e+00> : vector<4x256xf32>
    %64 = tpu.matmul %63, %62, %cst_30 {dimension_numbers = #tpu.dot_dimension_numbers<[1], [0], [0], [1], [0, 0, 1, 1], [], []>} : vector<4x72xf32>, vector<72x256xf32>, vector<4x256xf32> -> vector<4x256xf32>
    %c0_31 = arith.constant 0 : index
    %c0_32 = arith.constant 0 : index
    %65 = vector.load %arg3[%c0_31, %c0_32] : memref<4x1xf32, #tpu.memory_space<vmem>>, vector<4x1xf32>
    %66 = vector.broadcast %65 : vector<4x1xf32> to vector<4x256xf32>
    %67 = arith.addf %64, %66 : vector<4x256xf32>
    %c0_33 = arith.constant 0 : index
    %c0_34 = arith.constant 0 : index
    %c0_35 = arith.constant 0 : index
    %68 = vector.load %arg5[%c0_33, %c0_34, %c0_35] : memref<1x4x256xf32, #tpu.memory_space<vmem>>, vector<1x4x256xf32>
    %69 = vector.shape_cast %68 : vector<1x4x256xf32> to vector<4x256xf32>
    %70 = vector.shape_cast %67 : vector<4x256xf32> to vector<1x4x256xf32>
    tpu.vector_store %arg5[%c0_33, %c0_34, %c0_35], %70 {strides = array<i32>} : memref<1x4x256xf32, #tpu.memory_space<vmem>>, vector<1x4x256xf32>,
    return
  }
  func.func @transform_0(%arg0: i32) -> (i32, i32, i32) {
    %c0_i32 = arith.constant 0 : i32
    %c0_i32_0 = arith.constant 0 : i32
    %c0_i32_1 = arith.constant 0 : i32
    return %arg0, %c0_i32, %c0_i32_0 : i32, i32, i32
  }
  func.func @transform_1(%arg0: i32) -> (i32, i32) {
    %c0_i32 = arith.constant 0 : i32
    %c0_i32_0 = arith.constant 0 : i32
    %c0_i32_1 = arith.constant 0 : i32
    return %c0_i32, %c0_i32_0 : i32, i32
  }
  func.func @transform_2(%arg0: i32) -> (i32, i32) {
    %c0_i32 = arith.constant 0 : i32
    %c0_i32_0 = arith.constant 0 : i32
    %c0_i32_1 = arith.constant 0 : i32
    return %c0_i32, %c0_i32_0 : i32, i32
  }
  func.func @transform_3(%arg0: i32) -> (i32, i32, i32) {
    %c0_i32 = arith.constant 0 : i32
    %c0_i32_0 = arith.constant 0 : i32
    %c0_i32_1 = arith.constant 0 : i32
    %c0_i32_2 = arith.constant 0 : i32
    return %c0_i32, %c0_i32_0, %c0_i32_1 : i32, i32, i32
  }
  func.func @transform_4(%arg0: i32) -> (i32, i32, i32) {
    %c0_i32 = arith.constant 0 : i32
    %c0_i32_0 = arith.constant 0 : i32
    %c0_i32_1 = arith.constant 0 : i32
    return %arg0, %c0_i32, %c0_i32_0 : i32, i32, i32
  }
}

</mosaic_0001>

<bundles_post_ra>
// kernel: atrous_module_forward.1
= control target key start
LH: loop header
LB: loop body
LE: loop exit
PB: predicated region body
PF: predicated region fallthrough
CT: control target
= control target key end

     0   :  { %s650_s15 = smov 0   ;;  %s756_s0 = inlined_call_operand.vmem [shape: f32[2,8,256], index: 0, kind: input, shape index: {}]   ;;  %s757_s1 = inlined_call_operand.vmem [shape: f32[4,72], index: 1, kind: input, shape index: {}]   ;;  %s758_s2 = inlined_call_operand.vmem [shape: f32[4,1], index: 2, kind: input, shape index: {}]   ;;  %s759_s3 = inlined_call_operand.vmem [shape: f32[9,1,256], index: 3, kind: input, shape index: {}]   ;;  %s760_s4 = inlined_call_operand.vmem [shape: f32[2,4,256], index: 4, kind: output, shape index: {}]  }
   0x1 LB: > { %s550_s16 = sadd.s32 4294967295, %s613_s15   ;;  %p554_p0 = scmp.ge.s32.totalorder %s613_s15, 1  ;;  %s613_s15 = sphi %s650_s15, %s14_s15  }
   0x2   : > { %p162_p1 = scmp.lt.s32.totalorder %s613_s15, 3 }
   0x4   : > { %p163_p2 = pnand %p554_p0, %p162_p1 }
   0x5   : > { %p188_p3 = scmp.lt.s32.totalorder (!%p163_p2), %s550_s16, 1  ;;  %s615_s21 = smov (!%p163_p2), 32   ;;  %v622_v2 = vmov (!%p163_p2), 0.0   ;;  %v623_v3 = vmov (!%p163_p2), 0   ;;  %v409_v4 = vld [vmem:[%s758_s2] sm:$0xf] (!%p163_p2)  ;;  %v213_v5 = vlaneseq (!%p163_p2) }
   0x6   : > { %166 = sbr.rel (%p163_p2) target bundleno = 384 (0x180), region = 36  ;;  %s616_s22 = smov (!%p163_p2), 34   ;;  %483 = vmatprep.mubr.f32.mxu0 (!%p163_p2), %v622_v2  ;;  %606 = vset.pattern.permute.xlu0 (!%p163_p2), %v623_v3  ;;  %v559_v8 = vld [vmem:[%s759_s3 + $0x2] sm:$0x3] (!%p163_p2)  ;;  %v211_v9 = vld [vmem:[%s759_s3] sm:$0x3] (!%p163_p2) }
   0x7   : > { %s617_s23 = smov (!%p163_p2), 30   ;;  %s618_s24 = smov (!%p163_p2), 2   ;;  %v214_v6 = vshrl.u32 (!%p163_p2), %v213_v5, 7  ;;  %vm229_vm0 = vcmask (!%p163_p2), 261120   ;;  %vm206_vm1 = vcmask (!%p163_p2), 277504   ;;  %vm253_vm2 = vcmask (!%p163_p2), 244736  }
   0x8   : > { %s619_s25 = smov (!%p163_p2), 126   ;;  %s620_s26 = smov (!%p163_p2), 96   ;;  %v560_v27 = vld [vmem:[%s759_s3 + $0x4] sm:$0x3] (!%p163_p2)  ;;  %v561_v28 = vld [vmem:[%s759_s3 + $0x6] sm:$0x3] (!%p163_p2) }
   0x9   : > { %s621_s27 = smov (!%p163_p2), 98   ;;  %s624_s28 = smov (!%p163_p2), 94   ;;  %v687_v7 = vsub.s32 (!%p163_p2), 0, %v214_v6  ;;  %v695_v10 = vsub.s32 (!%p163_p2), 1, %v214_v6  ;;  %vm277_vm3 = vcmask (!%p163_p2), 15360   ;;  %vm316_vm4 = vcmask (!%p163_p2), 1031168  }
   0xa   : > { %v562_v33 = vld [vmem:[%s759_s3 + $0x8] sm:$0x3] (!%p163_p2)  ;;  %v563_v38 = vld [vmem:[%s759_s3 + $0xa] sm:$0x3] (!%p163_p2)  ;;  %v565_v53 = vld [vmem:[%s759_s3 + $0xe] sm:$0x3] (!%p163_p2) }
   0xb   : > { %v240_v13 = vrot.slane (!%p163_p2), %v559_v8, %v687_v7  ;;  %v216_v14 = vrot.slane (!%p163_p2), %v211_v9, %v687_v7  ;;  %v220_v17 = vrot.slane (!%p163_p2), %v211_v9, %v695_v10  ;;  %v244_v18 = vrot.slane (!%p163_p2), %v559_v8, %v695_v10  ;;  %v564_v54 = vld [vmem:[%s759_s3 + $0xc] sm:$0x3] (!%p163_p2) }
   0xc   : > { %v264_v34 = vrot.slane (!%p163_p2), %v560_v27, %v687_v7  ;;  %v268_v35 = vrot.slane (!%p163_p2), %v560_v27, %v695_v10  ;;  %v288_v36 = vrot.slane (!%p163_p2), %v561_v28, %v687_v7  ;;  %v292_v37 = vrot.slane (!%p163_p2), %v561_v28, %v695_v10 }
   0xd   : > { %s762_s16 = smov (!%p188_p3, %s550_s16), 1  ;;  %v307_v43 = vrot.slane %v562_v33, %v695_v10  ;;  %v303_v44 = vrot.slane %v562_v33, %v687_v7  ;;  %v327_v47 = vrot.slane %v563_v38, %v687_v7  ;;  %v331_v48 = vrot.slane %v563_v38, %v695_v10 }
   0xe   : > { %s570_s17 = sshll.u32 %s762_s16, 4  ;;  %vm364_vm5 = vcmask 785408   ;;  %v379_v63 = vrot.slane %v565_v53, %v695_v10  ;;  %vm340_vm6 = vcmask 801792   ;;  %vm388_vm7 = vcmask 769024  }
   0xf   : > { %s192_s20 = scalar_lea.vmem %s756_s0, %s570_s17  ;;  %vm415_vm8 = vcmask 588800  }
  0x10   : > { %v664_v0 = vld [vmem:[%s192_s20] sm:$0xff]  ;;  %v668_v1 = vld [vmem:[%s192_s20 + $0x8] sm:$0xff] }
  0x11   : > { %225 = vrot.lane.b32.xlu1 %v664_v0, %s615_s21  ;;  %202 = vrot.lane.b32.xlu0 %v664_v0, %s616_s22  ;;  %v311_v59 = vmul.f32 %v307_v43, %v668_v1  ;;  %v310_v60 = vmul.f32 %v303_v44, %v664_v0 }
  0x15   : > { %227 = vrot.lane.b32.xlu1 %v668_v1, %s615_s21  ;;  %204 = vrot.lane.b32.xlu0 %v668_v1, %s616_s22 }
  0x19   : > { %251 = vrot.lane.b32.xlu1 %v668_v1, %s617_s23  ;;  %249 = vrot.lane.b32.xlu0 %v664_v0, %s617_s23 }
  0x1d   : > { %275 = vrot.lane.b32.xlu1 %v668_v1, %s618_s24  ;;  %273 = vrot.lane.b32.xlu0 %v664_v0, %s618_s24 }
  0x21   : > { %312 = vrot.lane.b32.xlu1 %v664_v0, %s619_s25  ;;  %314 = vrot.lane.b32.xlu0 %v668_v1, %s619_s25 }
  0x25   : > { %362 = vrot.lane.b32.xlu1 %v668_v1, %s620_s26  ;;  %338 = vrot.lane.b32.xlu0 %v668_v1, %s621_s27 }
  0x29   : > { %360 = vrot.lane.b32.xlu1 %v664_v0, %s620_s26  ;;  %336 = vrot.lane.b32.xlu0 %v664_v0, %s621_s27  ;;  %s571_s27 = sshll.u32 %s762_s16, 3 }
  0x2a   : > { %s197_s30 = scalar_lea.vmem %s760_s4, %s571_s27 }
  0x2d   : > { %384 = vrot.lane.b32.xlu1 %v664_v0, %s624_s28  ;;  %386 = vrot.lane.b32.xlu0 %v668_v1, %s624_s28 }
  0x31   : > { %412 = vperm.xlu0 %606, %v409_v4   ;;  %v355_v4 = vrot.slane %v564_v54, %v695_v10 }
  0x83   : > { %v226_v11 = vpop.permute.xlu1 %225  ;;  %v203_v12 = vpop.permute.xlu0 %202 }
  0x84   : > { %v233_v15 = vsel %vm229_vm0, 0.0, %v226_v11  ;;  %v210_v16 = vsel %vm206_vm1, 0.0, %v203_v12 }
  0x85   : > { %v247_v21 = vmul.f32 %v240_v13, %v233_v15  ;;  %v223_v22 = vmul.f32 %v216_v14, %v210_v16  ;;  %v375_v13 = vrot.slane %v565_v53, %v687_v7  ;;  %v351_v14 = vrot.slane %v564_v54, %v687_v7  ;;  %v566_v15 = vld [vmem:[%s759_s3 + $0x10] sm:$0x3] }
  0x87   : > { %v228_v19 = vpop.permute.xlu1 %227  ;;  %v205_v20 = vpop.permute.xlu0 %204  ;;  %v574_v32 = vpack.c.bf16 %v247_v21, %v223_v22 }
  0x88   : > { %v230_v23 = vsel %vm229_vm0, %v226_v11, %v228_v19  ;;  %v207_v24 = vsel %vm206_vm1, %v203_v12, %v205_v20 }
  0x89   : > { %v224_v25 = vmul.f32 %v220_v17, %v207_v24  ;;  %v248_v26 = vmul.f32 %v244_v18, %v230_v23  ;;  %v399_v23 = vrot.slane %v566_v15, %v687_v7  ;;  %v403_v24 = vrot.slane %v566_v15, %v695_v10 }
  0x8b   : > { %v252_v29 = vpop.permute.xlu1 %251  ;;  %v250_v30 = vpop.permute.xlu0 %249  ;;  %v572_v31 = vpack.c.bf16 %v248_v26, %v224_v25 }
  0x8c   : > { %v254_v39 = vsel %vm253_vm2, %v250_v30, %v252_v29  ;;  %v257_v40 = vsel %vm253_vm2, 0.0, %v250_v30 }
  0x8d   : > { %573 = vmatprep.subr.bf16.mxu0 %v572_v31  ;;  %v271_v49 = vmul.f32 %v264_v34, %v257_v40  ;;  %v272_v50 = vmul.f32 %v268_v35, %v254_v39 }
  0x8e   : > { %575 = vmatpush1.bf16.msra.mxu0 %v574_v32  ;;  %v408_v32 = vld [vmem:[%s757_s1] sm:$0xf] }
  0x8f   : > { %v276_v41 = vpop.permute.xlu1 %275  ;;  %v274_v42 = vpop.permute.xlu0 %273 }
  0x90   : > { %v278_v45 = vsel %vm277_vm3, %v274_v42, %v276_v41  ;;  %v281_v46 = vsel %vm277_vm3, 0.0, %v274_v42 }
  0x91   : > { %v295_v51 = vmul.f32 %v288_v36, %v281_v46  ;;  %v296_v52 = vmul.f32 %v292_v37, %v278_v45 }
  0x93   : > { %v313_v55 = vpop.permute.xlu1 %312  ;;  %v315_v56 = vpop.permute.xlu0 %314  ;;  %v576_v57 = vpack.c.bf16 %v296_v52, %v272_v50  ;;  %v578_v58 = vpack.c.bf16 %v295_v51, %v271_v49 }
  0x94   : > { %v317_v61 = vsel %vm316_vm4, %v313_v55, %v315_v56  ;;  %v320_v62 = vsel %vm316_vm4, %v315_v56, 0.0 }
  0x95   : > { %v334_v2 = vmul.f32 %v327_v47, %v317_v61  ;;  %v335_v3 = vmul.f32 %v331_v48, %v320_v62  ;;  %577 = vmatprep.subr.bf16.mxu0 %v576_v57 }
  0x96   : > { %579 = vmatpush1.bf16.msra.mxu0 %v578_v58 }
  0x97   : > { %v363_v5 = vpop.permute.xlu1 %362  ;;  %v339_v6 = vpop.permute.xlu0 %338  ;;  %v580_v8 = vpack.c.bf16 %v335_v3, %v311_v59  ;;  %v582_v1 = vpack.c.bf16 %v334_v2, %v310_v60 }
  0x98   : > { %v368_v0 = vsel %vm364_vm5, %v363_v5, 0.0  ;;  %v344_v9 = vsel %vm340_vm6, %v339_v6, 0.0 }
  0x99   : > { %v383_v11 = vmul.f32 %v379_v63, %v368_v0  ;;  %v359_v12 = vmul.f32 %v355_v4, %v344_v9  ;;  %581 = vmatprep.subr.bf16.mxu0 %v580_v8 }
  0x9a   : > { %583 = vmatpush1.bf16.msra.mxu0 %v582_v1 }
  0x9b   : > { %v361_v16 = vpop.permute.xlu1 %360  ;;  %v337_v17 = vpop.permute.xlu0 %336  ;;  %v584_v18 = vpack.c.bf16 %v383_v11, %v359_v12 }
  0x9c   : > { %v365_v19 = vsel %vm364_vm5, %v361_v16, %v363_v5  ;;  %v341_v20 = vsel %vm340_vm6, %v337_v17, %v339_v6 }
  0x9d   : > { %v382_v21 = vmul.f32 %v375_v13, %v365_v19  ;;  %v358_v22 = vmul.f32 %v351_v14, %v341_v20  ;;  %585 = vmatprep.subr.bf16.mxu0 %v584_v18 }
  0x9f   : > { %v385_v25 = vpop.permute.xlu1 %384  ;;  %v387_v26 = vpop.permute.xlu0 %386  ;;  %v586_v27 = vpack.c.bf16 %v382_v21, %v358_v22 }
  0xa0   : > { %v389_v28 = vsel %vm388_vm7, %v385_v25, %v387_v26  ;;  %v392_v29 = vsel %vm388_vm7, %v387_v26, 0.0 }
  0xa1   : > { %v406_v30 = vmul.f32 %v399_v23, %v389_v28  ;;  %v407_v31 = vmul.f32 %v403_v24, %v392_v29  ;;  %587 = vmatpush1.bf16.msra.mxu0 %v586_v27 }
  0xa3   : > { %435 = vmatprep.subr.mxu0 %v407_v31 }
  0xa5   : > { %436 = vmatpush1.msra.mxu0 %v406_v30 }
  0xa6   : > { %567 = vmatmul.mubr.msk.f32.vlgmr.msra.gmra.mrb[0].mxu0 %vm415_vm8, %v408_v32 }
  0xb0   : > { %v413_v7 = vpop.permute.xlu0 %412 }
 0x179   : > { %v485_v33 = vpop.f32.mrb[0].mxu0 }
 0x17a   : > { %v486_v10 = vadd.f32 %v485_v33, %v413_v7  ;;  %v487_v34 = vpop.f32.mrb[1].mxu0 }
 0x17b   : > { %v488_v35 = vadd.f32 %v487_v34, %v413_v7 }
 0x17d   : > { %v492_v36 = vcombine.low %v486_v10, %v488_v35 }
 0x17f   : > { %494 = vst [vmem:[%s197_s30] sm:$0xff] %v492_v36 }
 0x180 PF: > { %s14_s15 = sadd.s32 1, %s613_s15  }
 0x181   : > { %p11_p4 = scmp.ge.s32.totalorder %s14_s15, 4  }
 0x183   :  { %13 = sbr.rel (!%p11_p4) target bundleno = 1 (0x1), region = 74 }

</bundles_post_ra>
